<compile_context>
chip_gen: v5e
topology: v5e:2x2
jax: 0.10.0
libtpu: 0.0.40
codegen_flags: <defaults>
</compile_context>

<pallas_src>
import math

import jax
import jax.numpy as jnp
from jax.experimental import pallas as pl
from jax.experimental.pallas import tpu as pltpu


# VMEM sizing: budget for the double-buffered per-step tiles, and the scoped
# limit we ask Mosaic for (fits v7x 64 MiB physical, raises v5e 16 MiB default).
_VMEM_TILE_BUDGET = 24 << 20
_VMEM_LIMIT_BYTES = 32 << 20


def dummy_embedder_kernel(tf_ref, m_ref, o_ref):
    # tf_ref: [tb, K]   packed temporal features (+ ones column for the bias)
    # m_ref:  [K, Ep]   folded block-diagonal affine weight (bias = last row)
    # o_ref:  [tb, Ep]  lane-dense output block
    o_ref[...] = jnp.dot(
        tf_ref[...], m_ref[...], preferred_element_type=jnp.float32
    ).astype(o_ref.dtype)


def fold_params(params):
    """Fold 4x Linear(1,E) + fusion Linear(4E,E) into one affine map.

    Returns M: [4, E], c: [E] so that out = tf @ M + c.
    """
    w_emb = params["w_emb"]            # [4, E]
    b_emb = params["b_emb"]            # [4, E]
    wf = params["w_fusion_full"]       # [E, 4E]
    bf = params["b_fusion"]            # [E]
    E = w_emb.shape[1]
    wf3 = wf.reshape(E, 4, E)          # wf3[f, k, e] = W_f[f, k*E + e]
    M = jnp.einsum("ke,fke->kf", w_emb, wf3)                 # [4, E]
    c = bf + jnp.einsum("ke,fke->f", b_emb, wf3)             # [E]
    return M, c


def _pick_pack_factor(B, E):
    """Rows packed per output row so the output last dim is a multiple of 128."""
    if E % 128 == 0:
        return 1
    r = math.lcm(E, 128) // E
    if r * E > 2048 or B % r != 0:
        return 1                       # fall back (masked stores, still correct)
    return r


def _pack_affine(M, c, r):
    """Block-diagonal replication of M (r blocks) with the bias as last row."""
    E = M.shape[1]
    K = 4 * r + 1
    Mp = jnp.zeros((K, r * E), M.dtype)
    for j in range(r):                 # r is a static Python int
        Mp = Mp.at[j * 4:(j + 1) * 4, j * E:(j + 1) * E].set(M)
    Mp = Mp.at[K - 1, :].set(jnp.tile(c, r))
    return Mp


def _pick_batch_tile(b_rows, row_bytes, budget_bytes):
    """Largest batch tile that divides b_rows, fits the double-buffered VMEM
    budget, and (preferably) leaves >= 2 grid iterations for megacore split."""
    candidates = [
        tb for tb in (2048, 1024, 512, 256, 128, 64, 32, 16, 8)
        if b_rows % tb == 0 and 2 * tb * row_bytes <= budget_bytes
    ]
    if not candidates:
        return 8 if b_rows % 8 == 0 else b_rows   # full-extent block is legal
    multi = [tb for tb in candidates if b_rows // tb >= 2]
    return multi[0] if multi else candidates[0]


def dummy_embedder(temporal_features, M, c, *, out_dtype=jnp.float32,
                   tb=None, force_pallas=False):
    """temporal_features: [B, 4] f32; M: [4, E]; c: [E] (pre-folded)."""
    B = temporal_features.shape[0]
    E = M.shape[1]

    out_bytes = B * E * jnp.dtype(out_dtype).itemsize
    if not force_pallas and out_bytes < (1 << 20):
        # Tiny problem: pallas_call launch + per-step overhead dominates.
        return (temporal_features @ M + c[None, :]).astype(out_dtype)

    r = _pick_pack_factor(B, E)
    Bp, Ep, K = B // r, r * E, 4 * r + 1

    tf_p = temporal_features.reshape(Bp, 4 * r)
    ones = jnp.ones((Bp, 1), temporal_features.dtype)
    tf_aug = jnp.concatenate([tf_p, ones], axis=1)            # [Bp, K]
    Mp = _pack_affine(M, c, r)                                 # [K, Ep]

    # Double-buffered working set per row: out row (Ep lanes) + tf row padded
    # to >= 128 lanes, both f32 in VMEM.
    row_bytes = (Ep + 128) * 4
    if tb is None:
        tb = _pick_batch_tile(Bp, row_bytes, _VMEM_TILE_BUDGET)
    assert Bp % tb == 0, f"batch tile {tb} must divide packed batch {Bp}"
    assert tb == Bp or tb % 8 == 0, f"batch tile {tb} violates (8,128) rule"

    grid = (Bp // tb,)
    out_p = pl.pallas_call(
        dummy_embedder_kernel,
        out_shape=jax.ShapeDtypeStruct((Bp, Ep), out_dtype),
        grid_spec=pltpu.PrefetchScalarGridSpec(
            num_scalar_prefetch=0,
            grid=grid,
            in_specs=[
                pl.BlockSpec((tb, K), lambda i: (i, 0)),   # packed tf block
                pl.BlockSpec((K, Ep), lambda i: (0, 0)),   # folded weight (replicated)
            ],
            out_specs=pl.BlockSpec((tb, Ep), lambda i: (i, 0)),
        ),
        compiler_params=pltpu.CompilerParams(
            dimension_semantics=("parallel",),        # megacore split on v7x
            vmem_limit_bytes=_VMEM_LIMIT_BYTES,
        ),
    )(tf_aug, Mp)
    # Row-major view back to [B, E]; identical memory layout, free.
    return out_p.reshape(B, E)


def init_params(key, embedding_dim):
    """Deterministic synthetic parameters matching the PyTorch module shapes."""
    E = embedding_dim
    ks = jax.random.split(key, 4)
    # Four Linear(1, E): weight [E, 1] stored stacked as [4, E]; bias [E].
    w_emb = jax.random.normal(ks[0], (4, E), jnp.float32) * 0.1
    b_emb = jax.random.normal(ks[1], (4, E), jnp.float32) * 0.1
    # Fusion Linear(4E, E): weight [E, 4E], bias [E].
    w_fusion_full = jax.random.normal(ks[2], (E, 4 * E), jnp.float32) * 0.1
    b_fusion = jax.random.normal(ks[3], (E,), jnp.float32) * 0.1
    return {
        "w_emb": w_emb,
        "b_emb": b_emb,
        "w_fusion_full": w_fusion_full,
        "b_fusion": b_fusion,
    }


def reference(temporal_features, params):
    """Pure-JAX reference mirroring the PyTorch forward (dropout = identity)."""
    embs = []
    for k in range(4):
        x_k = temporal_features[:, k:k + 1]                   # [B, 1]
        embs.append(x_k * params["w_emb"][k][None, :] + params["b_emb"][k][None, :])
    cat = jnp.concatenate(embs, axis=1)                       # [B, 4E]
    return cat @ params["w_fusion_full"].T + params["b_fusion"][None, :]


if __name__ == "__main__":
    B, E = 64, 32
    key = jax.random.PRNGKey(0)
    k_x, k_p = jax.random.split(key)

    temporal_features = jax.random.normal(k_x, (B, 4), jnp.float32)
    params = init_params(k_p, E)

    # Fold weights once in the wrapper (cheap O(E^2) prep, outside the kernel).
    M, c = fold_params(params)

    # force_pallas so the demo exercises the kernel despite the tiny shape.
    out = dummy_embedder(temporal_features, M, c, force_pallas=True)
    out = jax.block_until_ready(out)

    ref = reference(temporal_features, params)
    assert out.shape == (B, E)
    assert jnp.allclose(out, ref, atol=1e-4, rtol=1e-4), "mismatch vs reference"

    print("KERNEL_OK")
</pallas_src>

<mosaic_0001>
module attributes {stable_mosaic.version = 11 : i64} {
  func.func @dummy_embedder_kernel(%arg0: i32, %arg1: memref<8x17xf32, #tpu.memory_space<vmem>>, %arg2: memref<17x128xf32, #tpu.memory_space<vmem>>, %arg3: memref<8x128xf32, #tpu.memory_space<vmem>>) attributes {dimension_semantics = [#tpu.dimension_semantics<parallel>], iteration_bounds = array<i64: 2>, scalar_prefetch = 0 : i64, scratch_operands = 0 : i64, tpu.core_type = #tpu.core_type<tc>, window_params = [{transform_indices = @transform_0, window_bounds = array<i64: 8, 17>}, {pipeline_mode = #tpu.pipeline_mode<synchronous>, transform_indices = @transform_1, window_bounds = array<i64: 17, 128>}, {transform_indices = @transform_2, window_bounds = array<i64: 8, 128>}]} {
    %c0 = arith.constant 0 : index
    %c0_0 = arith.constant 0 : index
    %0 = vector.load %arg1[%c0, %c0_0] : memref<8x17xf32, #tpu.memory_space<vmem>>, vector<8x17xf32>
    %c0_1 = arith.constant 0 : index
    %c0_2 = arith.constant 0 : index
    %1 = vector.load %arg2[%c0_1, %c0_2] : memref<17x128xf32, #tpu.memory_space<vmem>>, vector<17x128xf32>
    %cst = arith.constant dense<0.000000e+00> : vector<8x128xf32>
    %2 = tpu.matmul %0, %1, %cst {dimension_numbers = #tpu.dot_dimension_numbers<[1], [0], [0], [1], [0, 0, 1, 1], [], []>} : vector<8x17xf32>, vector<17x128xf32>, vector<8x128xf32> -> vector<8x128xf32>
    %c0_3 = arith.constant 0 : index
    %c0_4 = arith.constant 0 : index
    %3 = vector.load %arg3[%c0_3, %c0_4] : memref<8x128xf32, #tpu.memory_space<vmem>>, vector<8x128xf32>
    tpu.vector_store %arg3[%c0_3, %c0_4], %2 {strides = array<i32>} : memref<8x128xf32, #tpu.memory_space<vmem>>, vector<8x128xf32>,
    return
  }
  func.func @transform_0(%arg0: i32) -> (i32, i32) {
    %c0_i32 = arith.constant 0 : i32
    %c0_i32_0 = arith.constant 0 : i32
    return %arg0, %c0_i32 : i32, i32
  }
  func.func @transform_1(%arg0: i32) -> (i32, i32) {
    %c0_i32 = arith.constant 0 : i32
    %c0_i32_0 = arith.constant 0 : i32
    %c0_i32_1 = arith.constant 0 : i32
    return %c0_i32, %c0_i32_0 : i32, i32
  }
  func.func @transform_2(%arg0: i32) -> (i32, i32) {
    %c0_i32 = arith.constant 0 : i32
    %c0_i32_0 = arith.constant 0 : i32
    return %arg0, %c0_i32 : i32, i32
  }
}

</mosaic_0001>

<bundles_post_ra>
// kernel: tpu_custom_call.1
= control target key start
LH: loop header
LB: loop body
LE: loop exit
PB: predicated region body
PF: predicated region fallthrough
CT: control target
= control target key end

     0   :  { %7 = vsyncpa [#allocation3], 0  ;;  %s668_s0 = inlined_call_operand.hbm [shape: f32[16,17], index: 0, kind: input, shape index: {}]   ;;  %s669_s1 = inlined_call_operand.hbm [shape: f32[17,128], index: 1, kind: input, shape index: {}]   ;;  %s670_s2 = inlined_call_operand.hbm [shape: f32[16,128], index: 2, kind: output, shape index: {}]  }
   0x1   :  { %9 = vsyncpa [#allocation3 + $0x1], 0 }
   0x2   :  { %10 = vsyncpa [#allocation6], 0 }
   0x3   :  { %11 = vsyncpa [#allocation4], 0 }
   0x4   :  { %13 = vsyncpa [#allocation4 + $0x1], 0  ;;  %s532_s9 = smov 0   ;;  %s534_s10 = smov 0  }
   0x5   :  { %s536_s11 = smov 0   ;;  %s538_s12 = smov 0  }
   0x6 LB: > { %s108_s15 = sshll.u32 %s669_s1, 4  ;;  %s556_s16 = sadd.s32 4294967295, %s512_s12   ;;  %s512_s12 = sphi %s538_s12, %s680_s12   ;;  %s508_s11 = sphi %s536_s11, %s679_s11   ;;  %s504_s10 = sphi %s534_s10, %s678_s10   ;;  %s500_s9 = sphi %s532_s9, %s677_s9   ;;  %s109_s15 = int_to_ptr.hbm [resolvable:$true] %s108_s15 }
   0x7   : > { %p308_p0 = scmp.ge.s32.totalorder %s512_s12, 1  ;;  %p40_p1 = scmp.eq.s32.totalorder %s556_s16, 0 }
   0x8   : > { %p97_p2 = scmp.lt.s32.totalorder %s512_s12, 3  ;;  %s514_s18 = smov [#allocation5]  }
   0x9   : > { %s110_s19 = sshll.u32 %s514_s18, 4  ;;  %s515_s20 = smov 128   ;;  %s111_s19 = int_to_ptr.vmem [resolvable:$true] %s110_s19 }
   0xa   : > { %p561_p3 = pnand %p308_p0, %p97_p2  ;;  %s516_s21 = smov 8  }
   0xb   : > { %s307_s22 = sadd.s32 4294967294, %s512_s12   ;;  %s572_s23 = sadd.s32 1, %s512_s12  }
   0xc   : > { %p331_p4 = pneg %p561_p3  ;;  %s26_s24 = sadd.s32 1, %s508_s11 }
   0xd   : > { %s23_s25 = ssub.s32 %s512_s12, %s572_s23  ;;  %p33_p7 = scmp.ne.s32.totalorder %s508_s11, %s504_s10 }
   0xe   : > { %p332_p6 = pnand %p331_p4, %p40_p1  ;;  %p24_p8 = scmp.eq.s32.totalorder %s23_s25, 0 }
   0xf   : > { %p34_p9 = scmp.eq.s32.totalorder %s512_s12, 0  ;;  %p39_p10 = scmp.ne.s32.totalorder %s504_s10, %s500_s9 }
  0x10   : > { %334 = dma.hbm_to_vmem [thread:$0]  (!%p332_p6), %s109_s15, 384, %s111_s19, [#allocation6], %s515_s20, %s515_s20, %s516_s21  }
  0x11   : > { %p84_p11 = scmp.eq.s32.totalorder %s556_s16, 1  ;;  %p588_p12 = por %p40_p1, %p39_p10 }
  0x12   : > { %s584_s26 = scalar_select %p24_p8, %s508_s11, %s26_s24  }
  0x13   : > { %p592_p13 = por %p84_p11, %p33_p7  ;;  %p90_p0 = scmp.eq.s32.totalorder %s307_s22, 1 }
  0x14   : > { %p35_p2 = por %p34_p9, %p33_p7  ;;  %s124_s29 = sand.u32 1, %s508_s11  }
  0x15   : > { %p597_p4 = por %p90_p0, %p39_p10  ;;  %p344_p6 = scmp.lt.s32.totalorder %s512_s12, 2 }
  0x16   : > { %s311_s3 = sshll.u32 %s124_s29, 3  ;;  %s312_s4 = sshll.u32 %s512_s12, 3 }
  0x17   : > { %s132_s7 = scalar_lea.hbm %s668_s0, %s312_s4  ;;  %s128_s13 = scalar_lea.vmem [#allocation2], %s311_s3 }
  0x18   : > { %s134_s8 = sshll.u32 %s132_s7, 4  ;;  %s136_s14 = sshll.u32 %s128_s13, 4  ;;  %s135_s8 = int_to_ptr.hbm [resolvable:$true] %s134_s8  ;;  %s137_s14 = int_to_ptr.vmem [resolvable:$true] %s136_s14 }
  0x19   : > { %p606_p8 = pnand %p344_p6, %p35_p2  ;;  %s125_s18 = scalar_lea.sflag [#allocation3], %s124_s29 }
  0x1a   : > { %s412_s19 = sshra.s32 %s135_s8, 4  ;;  %s419_s24 = scalar_lea.hbm %s668_s0, 16  ;;  %s413_s19 = int_to_ptr.hbm [resolvable:$true] %s412_s19 }
  0x1b   : > { %s414_s20 = scalar_lea.hbm %s413_s19, 8  ;;  %p416_p9 = pneg %p606_p8 }
  0x1c   : > { %p415_p7 = scmp.ne.s32.totalorder %s413_s19, %s414_s20  ;;  %p420_p0 = scmp.lt.s32.totalorder %s413_s19, %s668_s0 }
  0x1d   : > { %p421_p2 = scmp.lt.s32.totalorder %s419_s24, %s414_s20 }
  0x1e   : > { %p417_p10 = pnand %p416_p9, %p415_p7 }
  0x1f   : > { %p422_p6 = por %p421_p2, %p420_p0 }
  0x20   : > { %p418_p11 = pneg %p417_p10 }
  0x22   : > { %p423_p5 = pnand %p422_p6, %p418_p11 }
  0x24   : > { %426 = shalt.err (!%p423_p5)
}
  0x25   : > { %338 = dma.hbm_to_vmem [thread:$0]  (!%p606_p8), %s135_s8, 128, %s137_s14, %s125_s18  }
  0x26   : > { %145 = sbr.rel (%p561_p3) target bundleno = 181 (0xb5), region = 28  ;;  %s623_s29 = sand.u32 (!%p561_p3), 1, %s504_s10  }
  0x27   : > { %s314_s4 = sshll.u32 (!%p561_p3), %s623_s29, 3  ;;  %s148_s5 = scalar_lea.sflag (!%p561_p3), [#allocation3], %s623_s29 }
  0x28   : > { %s151_s6 = scalar_lea.vmem (!%p561_p3), [#allocation2], %s314_s4 }
  0x2b   : > { %487 = dma.done.wait (%p588_p12), %s148_s5, 128  }
  0x2c   : > { %489 = vsyncadd (%p588_p12), %s148_s5, 4294967168 }
  0x2d   : > { %491 = dma.done.wait (%p40_p1), [#allocation6], 384  }
  0x2e   : > { %493 = vsyncadd (%p40_p1), [#allocation6], 4294966912  ;;  %vm186_vm0 = vcmask 1040384   ;;  %v181_v0 = vld [vmem:[#allocation5 + $0x10] sm:$0x1]  ;;  %v180_v1 = vld [vmem:[#allocation5 + $0x8] sm:$0xff] }
  0x2f   : > { %317 = vmatpush.msk.msra.mxu0 %vm186_vm0, %v181_v0  ;;  %v179_v2 = vld [vmem:[#allocation5] sm:$0xff]  ;;  %v178_v3 = vld [vmem:[%s151_s6] sm:$0xff]  ;;  %vm182_vm1 = vcmask 138240   ;;  %s320_s17 = sshll.u32 %s556_s16, 3  ;;  %s177_s13 = scalar_lea.vmem [#allocation7], %s314_s4 }
  0x30   : > { %s222_s8 = scalar_lea.hbm %s670_s2, %s320_s17  ;;  %s224_s14 = sshll.u32 %s177_s13, 4  ;;  %s225_s14 = int_to_ptr.vmem [resolvable:$true] %s224_s14 }
  0x31   : > { %204 = vmatpush.msra.mxu0 %v180_v1  ;;  %s226_s15 = sshll.u32 %s222_s8, 4  ;;  %s212_s18 = scalar_lea.sflag [#allocation4], %s623_s29  ;;  %s227_s15 = int_to_ptr.hbm [resolvable:$true] %s226_s15 }
  0x32   : > { %s456_s19 = sshra.s32 %s227_s15, 4  ;;  %s462_s22 = scalar_lea.hbm %s670_s2, 16  ;;  %s457_s19 = int_to_ptr.hbm [resolvable:$true] %s456_s19 }
  0x33   : > { %205 = vmatpush.msra.mxu0 %v179_v2  ;;  %s458_s20 = scalar_lea.hbm %s457_s19, 8  ;;  %p463_p12 = scmp.lt.s32.totalorder %s457_s19, %s670_s2 }
  0x34   : > { %318 = vmatmul.msk.f32.vlgmr.msra.gmra.mxu0 %vm182_vm1, %v178_v3  ;;  %p459_p1 = scmp.ne.s32.totalorder %s457_s19, %s458_s20  ;;  %p464_p8 = scmp.lt.s32.totalorder %s462_s22, %s458_s20 }
  0x36   : > { %p460_p3 = pnand %p459_p1, %p592_p13  ;;  %p465_p7 = por %p464_p8, %p463_p12 }
  0x38   : > { %p461_p5 = pneg %p460_p3 }
  0x3a   : > { %p466_p9 = pnand %p465_p7, %p461_p5 }
  0xb1   : > { %v207_v4 = vpop.f32.mrf.mxu0 }
  0xb2   : > { %210 = vst [vmem:[%s177_s13] sm:$0xff] %v207_v4 }
  0xb3   : > { %469 = shalt.err (!%p466_p9)
}
  0xb4   : > { %329 = dma.vmem_to_hbm [thread:$0]  (%p592_p13), %s225_s14, 128, %s227_s15, %s212_s18  }
  0xb5 PF: > { %s238_s3 = sand.u32 1, %s500_s9   ;;  %p676_p10 = scmp.ge.s32.totalorder %s512_s12, 2 }
  0xb6   : > { %s239_s29 = scalar_lea.sflag [#allocation4], %s238_s3 }
  0xb7   : > { %p340_p11 = pnand %p676_p10, %p597_p4 }
  0xb9   : > { %p341_p0 = pneg %p340_p11 }
  0xbb   : > { %495 = dma.done.wait (%p341_p0), %s239_s29, 128  }
  0xbc   : > { %497 = vsyncadd (%p341_p0), %s239_s29, 4294967168  ;;  %p16_p2 = scmp.ge.s32.totalorder %s572_s23, 4   ;;  %s677_s9 = smov %s504_s10 }
  0xbd   : > { %s678_s10 = smov %s508_s11  ;;  %s679_s11 = smov %s584_s26 }
  0xbe   : > { %s680_s12 = smov %s572_s23  ;;  %18 = sbr.rel (!%p16_p2) target bundleno = 6 (0x6), region = 77 }
  0xc3   :  { %245 = vsyncpa [#allocation3], 1 }
  0xc4   :  { %247 = vsyncpa [#allocation3 + $0x1], 1 }
  0xc5   :  { %248 = vsyncpa [#allocation6], 1 }
  0xc6   :  { %249 = vsyncpa [#allocation4], 1 }
  0xc7   :  { %251 = vsyncpa [#allocation4 + $0x1], 1 }

</bundles_post_ra>
